<compile_context>
chip_gen: v7x
topology: tpu7x:2x2x1
jax: 0.10.0
libtpu: 0.0.40
codegen_flags: <defaults>
</compile_context>

<pallas_src>
import functools

import jax
import jax.numpy as jnp
from jax.experimental import pallas as pl
from jax.experimental.pallas import tpu as pltpu

BN_EPS = 1e-5


def fire_head_kernel(x_ref, w1_ref, b1_ref, w2_ref, b2_ref, out2_ref, out1_ref):
    # x_ref: (TB, C, HW) feature map tile in native NCHW order (spatial flattened).
    x = x_ref[...].astype(jnp.float32)

    # AdaptiveAvgPool2d(1) as a lane-axis sum; the 1/HW scale is folded into w1.
    pooled = jnp.sum(x, axis=-1)                               # (TB, C)

    # head1 (BN + 1/HW already folded into w1/b1) + tanh
    y = jnp.dot(pooled, w1_ref[...],
                preferred_element_type=jnp.float32) + b1_ref[...]   # (TB, F)
    y = jnp.tanh(y)
    out1_ref[...] = y.astype(out1_ref.dtype)

    # head2
    out2 = jnp.dot(y, w2_ref[...],
                   preferred_element_type=jnp.float32) + b2_ref[...]  # (TB, NC)
    out2_ref[...] = out2.astype(out2_ref.dtype)


def _pick_tb(B, C, HW, itemsize, vmem_budget_bytes=16 * 1024 * 1024):
    """Largest batch tile whose double-buffered x working set fits the budget."""
    per_sample = C * HW * itemsize
    tb = max(1, vmem_budget_bytes // (2 * per_sample))
    if tb >= B:
        return B
    # second-to-last output block dim must be sublane-friendly when < full B
    return max(8, (tb // 8) * 8)


@functools.partial(jax.jit, static_argnames=())
def fire_model_head(x_nchw, params):
    """x_nchw: (B, C, H, W) backbone feature map. Returns [out2, out1]."""
    B, C, H, W = x_nchw.shape
    HW = H * W
    # Free, contiguous reshape — no transpose / extra HBM round-trip.
    x = x_nchw.reshape(B, C, HW)

    # Fold eval-mode BatchNorm1d and the 1/HW average-pool scale into head1.
    scale = params["gamma"] * jax.lax.rsqrt(params["rv"] + BN_EPS)     # (1, F)
    w1_eff = (params["w1"] * scale) * (1.0 / HW)                       # (C, F)
    b1_eff = (params["b1"] - params["rm"]) * scale + params["beta"]    # (1, F)
    w2 = params["w2"]                                                  # (F, NC)
    b2 = params["b2"]                                                  # (1, NC)

    F = w1_eff.shape[1]
    NC = w2.shape[1]

    TB = _pick_tb(B, C, HW, x.dtype.itemsize)
    pad = (-B) % TB
    if pad:
        x = jnp.pad(x, ((0, pad), (0, 0), (0, 0)))
    BP = B + pad
    grid = (BP // TB,)

    out2, out1 = pl.pallas_call(
        fire_head_kernel,
        out_shape=(jax.ShapeDtypeStruct((BP, NC), jnp.float32),
                   jax.ShapeDtypeStruct((BP, F), jnp.float32)),
        grid=grid,
        in_specs=[
            pl.BlockSpec((TB, C, HW), lambda i: (i, 0, 0)),   # feature map tile
            pl.BlockSpec((C, F), lambda i: (0, 0)),           # folded head1 weight
            pl.BlockSpec((1, F), lambda i: (0, 0)),           # folded head1 bias
            pl.BlockSpec((F, NC), lambda i: (0, 0)),          # head2 weight
            pl.BlockSpec((1, NC), lambda i: (0, 0)),          # head2 bias
        ],
        out_specs=(pl.BlockSpec((TB, NC), lambda i: (i, 0)),
                   pl.BlockSpec((TB, F), lambda i: (i, 0))),
        compiler_params=pltpu.CompilerParams(
            dimension_semantics=("parallel",)),
    )(x, w1_eff, b1_eff, w2, b2)

    if pad:
        out2 = out2[:B]
        out1 = out1[:B]
    return [out2, out1]


def reference_head(x_nchw, params):
    """Plain-JAX reference for correctness checking."""
    pooled = jnp.mean(x_nchw, axis=(2, 3))                    # (B, C)
    y = pooled @ params["w1"] + params["b1"]                  # (B, F)
    y = (y - params["rm"]) * jax.lax.rsqrt(params["rv"] + BN_EPS) \
        * params["gamma"] + params["beta"]
    y = jnp.tanh(y)
    out2 = y @ params["w2"] + params["b2"]
    return [out2, y]


def init_params(key, fc_features, feat_dim, class_number):
    k1, k2, k3, k4, k5, k6 = jax.random.split(key, 6)
    # Deterministic synthetic parameters (uniform, roughly PyTorch Linear scale).
    lim1 = 1.0 / (fc_features ** 0.5)
    lim2 = 1.0 / (feat_dim ** 0.5)
    return {
        "w1": jax.random.uniform(k1, (fc_features, feat_dim), jnp.float32, -lim1, lim1),
        "b1": jax.random.uniform(k2, (1, feat_dim), jnp.float32, -lim1, lim1),
        "gamma": jnp.ones((1, feat_dim), jnp.float32),
        "beta": jnp.zeros((1, feat_dim), jnp.float32),
        "rm": jax.random.normal(k3, (1, feat_dim), jnp.float32) * 0.1,
        "rv": jnp.abs(jax.random.normal(k4, (1, feat_dim), jnp.float32)) * 0.1 + 1.0,
        "w2": jax.random.uniform(k5, (feat_dim, class_number), jnp.float32, -lim2, lim2),
        "b2": jax.random.uniform(k6, (1, class_number), jnp.float32, -lim2, lim2),
    }


if __name__ == "__main__":
    B, C, H, W = 2, 64, 8, 8        # backbone feature map (small synthetic shapes)
    FEAT_DIM = 3                    # feat_dim in FireModel
    CLASS_NUMBER = 4                # cfg['class_number']

    key = jax.random.PRNGKey(0)
    kx, kp = jax.random.split(key)
    x = jax.random.normal(kx, (B, C, H, W), jnp.float32)
    params = init_params(kp, C, FEAT_DIM, CLASS_NUMBER)

    out2, out1 = fire_model_head(x, params)
    out2 = jax.block_until_ready(out2)
    out1 = jax.block_until_ready(out1)

    ref2, ref1 = reference_head(x, params)
    assert jnp.allclose(out2, ref2, atol=1e-5, rtol=1e-5), "out2 mismatch"
    assert jnp.allclose(out1, ref1, atol=1e-5, rtol=1e-5), "out1 mismatch"

    print("KERNEL_OK")
</pallas_src>

<mosaic_0001>
module attributes {stable_mosaic.version = 11 : i64} {
  func.func @fire_head_kernel(%arg0: i32, %arg1: memref<2x64x64xf32, #tpu.memory_space<vmem>>, %arg2: memref<64x3xf32, #tpu.memory_space<vmem>>, %arg3: memref<1x3xf32, #tpu.memory_space<vmem>>, %arg4: memref<3x4xf32, #tpu.memory_space<vmem>>, %arg5: memref<1x4xf32, #tpu.memory_space<vmem>>, %arg6: memref<2x4xf32, #tpu.memory_space<vmem>>, %arg7: memref<2x3xf32, #tpu.memory_space<vmem>>) attributes {dimension_semantics = [#tpu.dimension_semantics<parallel>], iteration_bounds = array<i64: 1>, scalar_prefetch = 0 : i64, scratch_operands = 0 : i64, tpu.core_type = #tpu.core_type<tc>, window_params = [{transform_indices = @transform_0, window_bounds = array<i64: 2, 64, 64>}, {pipeline_mode = #tpu.pipeline_mode<synchronous>, transform_indices = @transform_1, window_bounds = array<i64: 64, 3>}, {pipeline_mode = #tpu.pipeline_mode<synchronous>, transform_indices = @transform_2, window_bounds = array<i64: 1, 3>}, {pipeline_mode = #tpu.pipeline_mode<synchronous>, transform_indices = @transform_3, window_bounds = array<i64: 3, 4>}, {pipeline_mode = #tpu.pipeline_mode<synchronous>, transform_indices = @transform_4, window_bounds = array<i64: 1, 4>}, {transform_indices = @transform_5, window_bounds = array<i64: 2, 4>}, {transform_indices = @transform_6, window_bounds = array<i64: 2, 3>}]} {
    %c0 = arith.constant 0 : index
    %c0_0 = arith.constant 0 : index
    %c0_1 = arith.constant 0 : index
    %0 = vector.load %arg1[%c0, %c0_0, %c0_1] : memref<2x64x64xf32, #tpu.memory_space<vmem>>, vector<2x64x64xf32>
    %cst = arith.constant dense<0.000000e+00> : vector<2x64xf32>
    %1 = vector.multi_reduction <add>, %0, %cst [2] : vector<2x64x64xf32> to vector<2x64xf32>
    %c0_2 = arith.constant 0 : index
    %c0_3 = arith.constant 0 : index
    %2 = vector.load %arg2[%c0_2, %c0_3] : memref<64x3xf32, #tpu.memory_space<vmem>>, vector<64x3xf32>
    %cst_4 = arith.constant dense<0.000000e+00> : vector<2x3xf32>
    %3 = tpu.matmul %1, %2, %cst_4 {dimension_numbers = #tpu.dot_dimension_numbers<[1], [0], [0], [1], [0, 0, 1, 1], [], []>} : vector<2x64xf32>, vector<64x3xf32>, vector<2x3xf32> -> vector<2x3xf32>
    %c0_5 = arith.constant 0 : index
    %c0_6 = arith.constant 0 : index
    %4 = vector.load %arg3[%c0_5, %c0_6] : memref<1x3xf32, #tpu.memory_space<vmem>>, vector<1x3xf32>
    %5 = vector.broadcast %4 : vector<1x3xf32> to vector<2x3xf32>
    %6 = arith.addf %3, %5 : vector<2x3xf32>
    %7 = math.tanh %6 : vector<2x3xf32>
    %c0_7 = arith.constant 0 : index
    %c0_8 = arith.constant 0 : index
    %8 = vector.load %arg7[%c0_7, %c0_8] : memref<2x3xf32, #tpu.memory_space<vmem>>, vector<2x3xf32>
    tpu.vector_store %arg7[%c0_7, %c0_8], %7 {strides = array<i32>} : memref<2x3xf32, #tpu.memory_space<vmem>>, vector<2x3xf32>,
    %c0_9 = arith.constant 0 : index
    %c0_10 = arith.constant 0 : index
    %9 = vector.load %arg4[%c0_9, %c0_10] : memref<3x4xf32, #tpu.memory_space<vmem>>, vector<3x4xf32>
    %cst_11 = arith.constant dense<0.000000e+00> : vector<2x4xf32>
    %10 = tpu.matmul %7, %9, %cst_11 {dimension_numbers = #tpu.dot_dimension_numbers<[1], [0], [0], [1], [0, 0, 1, 1], [], []>} : vector<2x3xf32>, vector<3x4xf32>, vector<2x4xf32> -> vector<2x4xf32>
    %c0_12 = arith.constant 0 : index
    %c0_13 = arith.constant 0 : index
    %11 = vector.load %arg5[%c0_12, %c0_13] : memref<1x4xf32, #tpu.memory_space<vmem>>, vector<1x4xf32>
    %12 = vector.broadcast %11 : vector<1x4xf32> to vector<2x4xf32>
    %13 = arith.addf %10, %12 : vector<2x4xf32>
    %c0_14 = arith.constant 0 : index
    %c0_15 = arith.constant 0 : index
    %14 = vector.load %arg6[%c0_14, %c0_15] : memref<2x4xf32, #tpu.memory_space<vmem>>, vector<2x4xf32>
    tpu.vector_store %arg6[%c0_14, %c0_15], %13 {strides = array<i32>} : memref<2x4xf32, #tpu.memory_space<vmem>>, vector<2x4xf32>,
    return
  }
  func.func @transform_0(%arg0: i32) -> (i32, i32, i32) {
    %c0_i32 = arith.constant 0 : i32
    %c0_i32_0 = arith.constant 0 : i32
    %c0_i32_1 = arith.constant 0 : i32
    return %arg0, %c0_i32, %c0_i32_0 : i32, i32, i32
  }
  func.func @transform_1(%arg0: i32) -> (i32, i32) {
    %c0_i32 = arith.constant 0 : i32
    %c0_i32_0 = arith.constant 0 : i32
    %c0_i32_1 = arith.constant 0 : i32
    return %c0_i32, %c0_i32_0 : i32, i32
  }
  func.func @transform_2(%arg0: i32) -> (i32, i32) {
    %c0_i32 = arith.constant 0 : i32
    %c0_i32_0 = arith.constant 0 : i32
    %c0_i32_1 = arith.constant 0 : i32
    return %c0_i32, %c0_i32_0 : i32, i32
  }
  func.func @transform_3(%arg0: i32) -> (i32, i32) {
    %c0_i32 = arith.constant 0 : i32
    %c0_i32_0 = arith.constant 0 : i32
    %c0_i32_1 = arith.constant 0 : i32
    return %c0_i32, %c0_i32_0 : i32, i32
  }
  func.func @transform_4(%arg0: i32) -> (i32, i32) {
    %c0_i32 = arith.constant 0 : i32
    %c0_i32_0 = arith.constant 0 : i32
    %c0_i32_1 = arith.constant 0 : i32
    return %c0_i32, %c0_i32_0 : i32, i32
  }
  func.func @transform_5(%arg0: i32) -> (i32, i32) {
    %c0_i32 = arith.constant 0 : i32
    %c0_i32_0 = arith.constant 0 : i32
    return %arg0, %c0_i32 : i32, i32
  }
  func.func @transform_6(%arg0: i32) -> (i32, i32) {
    %c0_i32 = arith.constant 0 : i32
    %c0_i32_0 = arith.constant 0 : i32
    return %arg0, %c0_i32 : i32, i32
  }
}

</mosaic_0001>

<bundles_post_ra>
// kernel: fire_model_head.1
= control target key start
LH: loop header
LB: loop body
LE: loop exit
PB: predicated region body
PF: predicated region fallthrough
CT: control target
= control target key end

     0   :  { %12 = vsyncpa [#allocation3], 0  ;;  %vm40_vm0 = vcmask 523264   ;;  %s686_s0 = inlined_call_operand.vmem [shape: f32[2,64,64], index: 0, kind: input, shape index: {}]   ;;  %s687_s1 = inlined_call_operand.vmem [shape: f32[64,3], index: 1, kind: input, shape index: {}]   ;;  %s688_s2 = inlined_call_operand.vmem [shape: f32[1,3], index: 2, kind: input, shape index: {}]   ;;  %s689_s3 = inlined_call_operand.vmem [shape: f32[3,4], index: 3, kind: input, shape index: {}]   ;;  %s690_s4 = inlined_call_operand.vmem [shape: f32[1,4], index: 4, kind: input, shape index: {}]   ;;  %s691_s5 = inlined_call_operand.hbm [shape: f32[2,4], index: 5, kind: output, shape index: {0}]   ;;  %s692_s6 = inlined_call_operand.hbm [shape: f32[2,3], index: 6, kind: output, shape index: {1}]  }
   0x1   :  { %v32_v0 = vld [vmem:[%s686_s0 + $0x40] sm:$0xff]  ;;  %v33_v2 = vld [vmem:[%s686_s0 + $0x48] sm:$0xff]  ;;  %v34_v8 = vld [vmem:[%s686_s0 + $0x50] sm:$0xff] }
   0x2   :  { %v24_v1 = vld [vmem:[%s686_s0] sm:$0xff]  ;;  %v65_v3 = vsel %vm40_vm0, %v32_v0, 0.0  ;;  %v25_v5 = vld [vmem:[%s686_s0 + $0x8] sm:$0xff]  ;;  %v68_v6 = vsel %vm40_vm0, %v33_v2, 0.0  ;;  %v26_v9 = vld [vmem:[%s686_s0 + $0x10] sm:$0xff] }
   0x3   :  { %v41_v4 = vsel %vm40_vm0, %v24_v1, 0.0  ;;  %66 = vadd.xlane.f32.xlu1 %v65_v3  ;;  %v44_v7 = vsel %vm40_vm0, %v25_v5, 0.0 }
   0x4   :  { %42 = vadd.xlane.f32.xlu0 %v41_v4 }
   0x7   :  { %69 = vadd.xlane.f32.xlu1 %v68_v6 }
   0x8   :  { %45 = vadd.xlane.f32.xlu0 %v44_v7 }
   0x9   :  { %13 = vsyncpa [#allocation5], 0  ;;  %v71_v10 = vsel %vm40_vm0, %v34_v8, 0.0  ;;  %v47_v11 = vsel %vm40_vm0, %v26_v9, 0.0  ;;  %v35_v12 = vld [vmem:[%s686_s0 + $0x58] sm:$0xff]  ;;  %v36_v16 = vld [vmem:[%s686_s0 + $0x60] sm:$0xff]  ;;  %v120_v50 = vlaneseq }
   0xa   :  { %v27_v13 = vld [vmem:[%s686_s0 + $0x18] sm:$0xff]  ;;  %v74_v14 = vsel %vm40_vm0, %v35_v12, 0.0  ;;  %v28_v17 = vld [vmem:[%s686_s0 + $0x20] sm:$0xff]  ;;  %v77_v18 = vsel %vm40_vm0, %v36_v16, 0.0  ;;  %v37_v20 = vld [vmem:[%s686_s0 + $0x68] sm:$0xff]  ;;  %v514_v35 = vmov 0.0|0.0  }
   0xb   :  { %72 = vadd.xlane.f32.xlu1 %v71_v10  ;;  %v50_v15 = vsel %vm40_vm0, %v27_v13, 0.0  ;;  %v53_v19 = vsel %vm40_vm0, %v28_v17, 0.0  ;;  %v29_v21 = vld [vmem:[%s686_s0 + $0x28] sm:$0xff]  ;;  %v80_v22 = vsel %vm40_vm0, %v37_v20, 0.0  ;;  %v38_v24 = vld [vmem:[%s686_s0 + $0x70] sm:$0xff]  ;;  %v39_v28 = vld [vmem:[%s686_s0 + $0x78] sm:$0xff]  ;;  %447 = vmatprep.subr.bf16.mxu0 %v514_v35 }
   0xc   :  { %48 = vadd.xlane.f32.xlu0 %v47_v11  ;;  %v56_v23 = vsel %vm40_vm0, %v29_v21, 0.0  ;;  %v30_v25 = vld [vmem:[%s686_s0 + $0x30] sm:$0xff]  ;;  %v83_v26 = vsel %vm40_vm0, %v38_v24, 0.0  ;;  %v31_v29 = vld [vmem:[%s686_s0 + $0x38] sm:$0xff]  ;;  %v86_v30 = vsel %vm40_vm0, %v39_v28, 0.0  ;;  %v89_v32 = vld [vmem:[%s687_s1] sm:$0xff] }
   0xd   :  { %v59_v27 = vsel %vm40_vm0, %v30_v25, 0.0  ;;  %v62_v31 = vsel %vm40_vm0, %v31_v29, 0.0  ;;  %v90_v33 = vld [vmem:[%s687_s1 + $0x8] sm:$0xff]  ;;  %v91_v36 = vld [vmem:[%s687_s1 + $0x10] sm:$0xff]  ;;  %v92_v37 = vld [vmem:[%s687_s1 + $0x18] sm:$0xff]  ;;  %vm515_vm1 = vmmov 0  }
   0xe   :  { %v448_v34 = vpack.c.bf16 %v90_v33, %v89_v32  ;;  %v451_v38 = vpack.c.bf16 %v92_v37, %v91_v36  ;;  %v93_v39 = vld [vmem:[%s687_s1 + $0x20] sm:$0xff]  ;;  %v94_v40 = vld [vmem:[%s687_s1 + $0x28] sm:$0xff]  ;;  %v95_v42 = vld [vmem:[%s687_s1 + $0x30] sm:$0xff]  ;;  %v516_v45 = vmov 0.0   ;;  %v121_v53 = vand.u32 127, %v120_v50  ;;  %s517_s23 = smov [#allocation4]  }
   0xf   :  { %75 = vadd.xlane.f32.xlu1 %v74_v14  ;;  %v454_v41 = vpack.c.bf16 %v94_v40, %v93_v39  ;;  %v96_v43 = vld [vmem:[%s687_s1 + $0x38] sm:$0xff]  ;;  %439 = vmatprep.mubr.msk.f32.mxu0 %vm515_vm1, %v516_v45  ;;  %v123_v58 = vshrl.u32 %v120_v50, 7  ;;  %vm131_vm2 = vcmask 130112   ;;  %vm138_vm3 = vcmask 195712   ;;  %s395_s24 = sshll.u32 %s517_s23, 4  ;;  %s396_s24 = int_to_ptr.vmem [resolvable:$true] %s395_s24 }
  0x10   :  { %51 = vadd.xlane.f32.xlu0 %v50_v15  ;;  %449 = vmatpush3.bf16.msra.mxu0 %v448_v34  ;;  %v457_v44 = vpack.c.bf16 %v96_v43, %v95_v42  ;;  %v126_v56 = vadd.s32 4294967288, %v121_v53  ;;  %v133_v57 = vadd.s32 4294967280, %v121_v53  ;;  %v140_v59 = vadd.s32 4294967272, %v121_v53  ;;  %s466_s25 = scalar_lea.vmem %s396_s24, 32  ;;  %p471_p1 = scmp.lt.s32.totalorder %s396_s24, %s396_s24 }
  0x11   :  { %450 = vmatprep.subr.bf16.mxu0 %v514_v35  ;;  %442 = vmatprep.subr.mxu1 %v516_v45  ;;  %v147_v60 = vadd.s32 4294967264, %v121_v53  ;;  %v154_v0 = vadd.s32 4294967256, %v121_v53  ;;  %v161_v2 = vadd.s32 4294967248, %v121_v53  ;;  %v124_v3 = vsub.s32 %v121_v53, %v123_v58  ;;  %p467_p0 = scmp.ne.s32.totalorder %s396_s24, %s466_s25  ;;  %p472_p2 = scmp.lt.s32.totalorder %s466_s25, %s466_s25 }
  0x12   :  { %444 = vmatprep.mubr.msk.f32.mxu1 %vm515_vm1, %v516_v45  ;;  %v129_v63 = vsub.s32 %v126_v56, %v123_v58  ;;  %v136_v1 = vsub.s32 %v133_v57, %v123_v58  ;;  %v143_v4 = vsub.s32 %v140_v59, %v123_v58  ;;  %v168_v8 = vadd.s32 4294967240, %v121_v53 }
  0x13   :  { %78 = vadd.xlane.f32.xlu1 %v77_v18  ;;  %v150_v5 = vsub.s32 %v147_v60, %v123_v58  ;;  %vm145_vm4 = vcmask 261312   ;;  %v157_v11 = vsub.s32 %v154_v0, %v123_v58  ;;  %vm152_vm5 = vcmask 326912   ;;  %p473_p3 = por %p472_p2, %p471_p1 }
  0x14   :  { %54 = vadd.xlane.f32.xlu0 %v53_v19  ;;  %452 = vmatpush3.bf16.msra.mxu0 %v451_v38  ;;  %v164_v14 = vsub.s32 %v161_v2, %v123_v58  ;;  %vm159_vm6 = vcmask 392512   ;;  %vm166_vm7 = vcmask 458112   ;;  %vm173_vm8 = vcmask 523712  }
  0x15   :  { %453 = vmatprep.subr.bf16.mxu0 %v514_v35  ;;  %vm214_vm9 = vcmask 1041409   ;;  %vm303_vm10 = vcmask 1042432   ;;  %vm299_vm11 = vcmask 23552   ;;  %vm289_vm12 = vcmask 17408   ;;  %p474_p4 = pnand %p473_p3, %p467_p0 }
  0x17   :  { %81 = vadd.xlane.f32.xlu1 %v80_v22 }
  0x18   :  { %57 = vadd.xlane.f32.xlu0 %v56_v23  ;;  %455 = vmatpush3.bf16.msra.mxu0 %v454_v41  ;;  %v171_v23 = vsub.s32 %v168_v8, %v123_v58 }
  0x19   :  { %456 = vmatprep.subr.bf16.mxu0 %v514_v35 }
  0x1b   :  { %84 = vadd.xlane.f32.xlu1 %v83_v26 }
  0x1c   :  { %60 = vadd.xlane.f32.xlu0 %v59_v27  ;;  %458 = vmatpush3.bf16.msra.mxu0 %v457_v44 }
  0x1f   :  { %87 = vadd.xlane.f32.xlu1 %v86_v30 }
  0x20   :  { %63 = vadd.xlane.f32.xlu0 %v62_v31 }
  0x90   :  { %v67_v46 = vpop.xlane.xlu1 %66 }
  0x91   :  { %v43_v47 = vpop.xlane.xlu0 %42  ;;  %v178_v15 = vrot.slane %v67_v46, %v124_v3 }
  0x92   :  { %v125_v16 = vrot.slane %v43_v47, %v124_v3  ;;  %v291_v47 = vld [vmem:[%s689_s3] sm:$0x7] }
  0x93   :  { %443 = vmatpush3.msk.msra.mxu1 %vm303_vm10, %v291_v47 }
  0x94   :  { %v70_v48 = vpop.xlane.xlu1 %69 }
  0x95   :  { %v46_v49 = vpop.xlane.xlu0 %45  ;;  %v182_v9 = vrot.slane %v70_v48, %v129_v63  ;;  %v407_v48 = vld [vmem:[%s688_s2] ss:$0 sm:$0xff] }
  0x96   :  { %v130_v10 = vrot.slane %v46_v49, %v129_v63 }
  0x97   :  { %v183_v24 = vsel %vm131_vm2, %v182_v9, %v178_v15 }
  0x98   :  { %v73_v51 = vpop.xlane.xlu1 %72  ;;  %v132_v25 = vsel %vm131_vm2, %v130_v10, %v125_v16 }
  0x99   :  { %v49_v52 = vpop.xlane.xlu0 %48  ;;  %v187_v12 = vrot.slane %v73_v51, %v136_v1 }
  0x9a   :  { %v137_v13 = vrot.slane %v49_v52, %v136_v1 }
  0x9b   :  { %v188_v28 = vsel %vm138_vm3, %v187_v12, %v183_v24 }
  0x9c   :  { %v76_v54 = vpop.xlane.xlu1 %75  ;;  %v139_v29 = vsel %vm138_vm3, %v137_v13, %v132_v25 }
  0x9d   :  { %v52_v55 = vpop.xlane.xlu0 %51  ;;  %v192_v17 = vrot.slane %v76_v54, %v143_v4 }
  0x9e   :  { %v144_v18 = vrot.slane %v52_v55, %v143_v4 }
  0x9f   :  { %v193_v32 = vsel %vm145_vm4, %v192_v17, %v188_v28 }
  0xa0   :  { %v79_v61 = vpop.xlane.xlu1 %78  ;;  %v146_v33 = vsel %vm145_vm4, %v144_v18, %v139_v29 }
  0xa1   :  { %v55_v62 = vpop.xlane.xlu0 %54  ;;  %v197_v19 = vrot.slane %v79_v61, %v150_v5 }
  0xa2   :  { %v151_v20 = vrot.slane %v55_v62, %v150_v5 }
  0xa3   :  { %v198_v34 = vsel %vm152_vm5, %v197_v19, %v193_v32 }
  0xa4   :  { %v82_v6 = vpop.xlane.xlu1 %81  ;;  %v153_v35 = vsel %vm152_vm5, %v151_v20, %v146_v33 }
  0xa5   :  { %v58_v7 = vpop.xlane.xlu0 %57  ;;  %v202_v26 = vrot.slane %v82_v6, %v157_v11 }
  0xa6   :  { %v158_v27 = vrot.slane %v58_v7, %v157_v11 }
  0xa7   :  { %v203_v38 = vsel %vm159_vm6, %v202_v26, %v198_v34 }
  0xa8   :  { %v85_v21 = vpop.xlane.xlu1 %84  ;;  %v160_v39 = vsel %vm159_vm6, %v158_v27, %v153_v35 }
  0xa9   :  { %v61_v22 = vpop.xlane.xlu0 %60  ;;  %v207_v30 = vrot.slane %v85_v21, %v164_v14 }
  0xaa   :  { %v165_v31 = vrot.slane %v61_v22, %v164_v14 }
  0xab   :  { %v208_v42 = vsel %vm166_vm7, %v207_v30, %v203_v38 }
  0xac   :  { %v88_v36 = vpop.xlane.xlu1 %87  ;;  %v167_v43 = vsel %vm166_vm7, %v165_v31, %v160_v39 }
  0xad   :  { %v64_v37 = vpop.xlane.xlu0 %63  ;;  %v212_v40 = vrot.slane %v88_v36, %v171_v23 }
  0xae   :  { %v172_v41 = vrot.slane %v64_v37, %v171_v23 }
  0xaf   :  { %v213_v44 = vsel %vm173_vm8, %v212_v40, %v208_v42 }
  0xb0   :  { %v174_v45 = vsel %vm173_vm8, %v172_v41, %v167_v43 }
  0xb1   :  { %v215_v46 = vsel %vm214_vm9, %v213_v44, %v174_v45 }
  0xb2   :  { %440 = vmatmul.mubr.msk.f32.vlgmr.msra.gmra.mrb[0].mxu0 %vm40_vm0, %v215_v46 }
 0x185   :  { %v284_v49 = vpop.f32.mrb[0].mxu0 }
 0x186   :  { %v285_v50 = vadd.f32 %v407_v48, %v284_v49  ;;  %v441_v51 = vpop.f32.mrb[1].mxu0 }
 0x188   :  { %464 = vtanh.f32 %v285_v50 }
 0x192   :  { %v465_v52 = vpop.eup %464 }
 0x193   :  { %445 = vmatmul.mubr.msk.f32.vlgmr.msra.gmra.mrb[0].mxu1 %vm299_vm11, %v465_v52  ;;  %290 = vst.msk [vmem:[#allocation4] sm:$0x3] %vm289_vm12, %v465_v52 }
 0x194   :  { %477 = shalt.err (!%p474_p4)
}
 0x195   :  { %s478_s26 = scalar_lea.hbm %s692_s6, 32 }
 0x196   :  { %p479_p5 = scmp.ne.s32.totalorder %s692_s6, %s478_s26  ;;  %p482_p6 = scmp.lt.u32.totalorder %s478_s26, %s692_s6 }
 0x198   :  { %p484_p7 = pnand %p482_p6, %p479_p5 }
 0x19a   :  { %487 = shalt.err (!%p484_p7)
}
 0x19b   :  { %398 = dma.vmem_to_hbm [thread:$0]  %s396_s24, 32, %s692_s6, [#allocation5]   ;;  %v409_v53 = vld [vmem:[%s690_s4] ss:$0 sm:$0xff]  ;;  %vm377_vm13 = vcmask 25600  }
 0x19c   :  { %s518_s10 = smov [#allocation2]  }
 0x19d   :  { %s385_s11 = sshll.u32 %s518_s10, 4  ;;  %s386_s11 = int_to_ptr.vmem [resolvable:$true] %s385_s11 }
 0x19e   :  { %s488_s12 = scalar_lea.vmem %s386_s11, 32  ;;  %p493_p9 = scmp.lt.s32.totalorder %s386_s11, %s386_s11 }
 0x19f   :  { %p489_p8 = scmp.ne.s32.totalorder %s386_s11, %s488_s12  ;;  %p494_p10 = scmp.lt.s32.totalorder %s488_s12, %s488_s12 }
 0x1a1   :  { %p495_p11 = por %p494_p10, %p493_p9 }
 0x1a3   :  { %p496_p12 = pnand %p495_p11, %p489_p8 }
 0x266   :  { %v373_v54 = vpop.f32.mrb[0].mxu1 }
 0x267   :  { %v374_v55 = vadd.f32 %v409_v53, %v373_v54  ;;  %v446_v56 = vpop.f32.mrb[1].mxu1 }
 0x269   :  { %378 = vst.msk [vmem:[#allocation2] sm:$0x3] %vm377_vm13, %v374_v55 }
 0x26a   :  { %499 = shalt.err (!%p496_p12)
}
 0x26b   :  { %s500_s14 = scalar_lea.hbm %s691_s5, 32 }
 0x26c   :  { %p501_p13 = scmp.ne.s32.totalorder %s691_s5, %s500_s14  ;;  %p504_p0 = scmp.lt.u32.totalorder %s500_s14, %s691_s5 }
 0x26e   :  { %p506_p1 = pnand %p504_p0, %p501_p13 }
 0x270   :  { %509 = shalt.err (!%p506_p1)
}
 0x271   :  { %388 = dma.vmem_to_hbm [thread:$0]  %s386_s11, 32, %s691_s5, [#allocation3]  }
 0x272   :  { %510 = dma.done.wait [#allocation3], 32  }
 0x273   :  { %511 = vsyncadd [#allocation3], 4294967264 }
 0x274   :  { %512 = dma.done.wait [#allocation5], 32  }
 0x275   :  { %513 = vsyncadd [#allocation5], 4294967264 }
 0x276   :  { %405 = vsyncpa [#allocation3], 1 }
 0x277   :  { %406 = vsyncpa [#allocation5], 1 }

</bundles_post_ra>
